<compile_context>
chip_gen: v7x
topology: tpu7x:2x2x1
jax: 0.10.0
libtpu: 0.0.40
codegen_flags: <defaults>
</compile_context>

<pallas_src>
import functools

import jax
import jax.numpy as jnp
import numpy as np
from jax.experimental import pallas as pl
from jax.experimental.pallas import tpu as pltpu


def _round_up(v, m=8):
    return (v + m - 1) // m * m


def _slab_rows(d, r):
    """Static sublane (row) offsets of each band inside the packed parameter slab."""
    o_bstack = 0                                 # [2D, R]   Gaussian-expansion matrix
    o_const = o_bstack + _round_up(2 * d)        # [1,  R]   sum_d c^2/den
    o_expand = o_const + 8                       # [R,  R*D] rule-expansion (0/1)
    o_repeat = o_expand + _round_up(r)           # [D,  R*D] feature-replication (0/1)
    o_w = o_repeat + _round_up(d)                # [R*D, C]  BN-affine-folded weights
    o_bias = o_w + _round_up(r * d)              # [R,  C]   folded rule biases
    total = o_bias + _round_up(r)
    return o_bstack, o_const, o_expand, o_repeat, o_w, o_bias, total


def _fnn_kernel(x_ref, p_ref, o_ref, *, in_dim, n_rules, n_classes, ampli):
    d, r, c = in_dim, n_rules, n_classes
    rd = r * d
    o_b, o_c, o_e, o_t, o_w, o_bb, _ = _slab_rows(d, r)

    x = x_ref[...]                                              # [N, D] f32

    # ---- firing strengths: ONE MXU matmul over [x | x^2] (K = 2D) -----------
    # z[n,r] = -sum_d (x-c)^2/den = [x | x^2] @ [2c/den ; -1/den] - sum_d c^2/den
    xx = jnp.concatenate([x, x * x], axis=1)                    # [N, 2D]
    z = (jnp.dot(xx, p_ref[o_b:o_b + 2 * d, :r],
                 preferred_element_type=jnp.float32)
         - p_ref[o_c:o_c + 1, :r])                              # [N, R]
    if ampli != 0.0:                                            # static; elided for 0
        z = z + ampli
    raw_frs = jnp.exp(z)
    # rule_masks are all ones in the reference module -> no-op multiply elided.
    denom = jnp.sum(raw_frs, axis=-1, keepdims=True) + 1e-10
    inv = pl.reciprocal(denom, approx=True)                     # EUP slot
    inv = inv * (2.0 - denom * inv)                             # 1 Newton step (VPU slack)
    frs = raw_frs * inv                                         # [N, R]

    # ---- BatchNorm1d (training-mode biased batch stats, eps=1e-5) -----------
    # The affine (gamma, beta) is folded into the consequent in the wrapper.
    mean = jnp.mean(x, axis=0, keepdims=True)                   # [1, D]
    xc = x - mean
    var = jnp.mean(xc * xc, axis=0, keepdims=True)              # [1, D]
    xhat = xc * jax.lax.rsqrt(var + 1e-5)                       # [N, D]

    # ---- rule expansion on the MXU (vex slot), not the VPU/XLU ---------------
    #   (frs @ E)[n, r*D+j]  = frs[n, r]
    #   (xhat @ T)[n, r*D+j] = xhat[n, j]
    frs_rep = jnp.dot(frs, p_ref[o_e:o_e + r, :rd],
                      preferred_element_type=jnp.float32)       # [N, R*D]
    xhat_rep = jnp.dot(xhat, p_ref[o_t:o_t + d, :rd],
                       preferred_element_type=jnp.float32)      # [N, R*D]
    a_body = frs_rep * xhat_rep                                 # one VPU multiply

    # ---- consequent: K = R*D (=128) main matmul + tiny bias matmul ----------
    out = jnp.dot(a_body, p_ref[o_w:o_w + rd, :c],
                  preferred_element_type=jnp.float32)           # [N, C]
    out = out + jnp.dot(frs, p_ref[o_bb:o_bb + r, :c],
                        preferred_element_type=jnp.float32)
    # NOTE: output is lane-narrow ([N, C] with C=4) -> masked store; fine for a
    # single call, pack many calls into a lane-dense slab if invoked repeatedly.
    o_ref[...] = out


def pack_params(centers, sigmas, ns_sigma, weights, biases, gamma, beta):
    """Fold all parameter-only math ONCE into a single lane-dense f32 slab."""
    d, r = centers.shape
    c = weights.shape[2]
    rd = r * d
    o_b, o_c, o_e, o_t, o_w, o_bb, rows = _slab_rows(d, r)
    lanes = max(128, _round_up(rd, 128))

    den = 2.0 * sigmas * sigmas + ns_sigma * ns_sigma           # [D, R]
    inv_den = 1.0 / den
    bstack = jnp.concatenate([2.0 * centers * inv_den, -inv_den], axis=0)   # [2D, R]
    const = jnp.sum(centers * centers * inv_den, axis=0, keepdims=True)     # [1, R]

    g = gamma.reshape(d)
    b = beta.reshape(d)
    # Fold BN affine: (xhat*g + b) @ W = xhat @ (g*W) + (b @ W)
    w_fold = (g.reshape(1, d, 1) * weights).reshape(rd, c)                  # [R*D, C]
    b_fold = biases + jnp.sum(b.reshape(1, d, 1) * weights, axis=1)         # [R, C]

    # 0/1 expansion matrices (exact in any matmul precision).
    expand = jnp.kron(jnp.eye(r, dtype=jnp.float32),
                      jnp.ones((1, d), jnp.float32))                        # [R, R*D]
    repeat = jnp.kron(jnp.ones((1, r), jnp.float32),
                      jnp.eye(d, dtype=jnp.float32))                        # [D, R*D]

    slab = jnp.zeros((rows, lanes), jnp.float32)
    slab = slab.at[o_b:o_b + 2 * d, :r].set(bstack)
    slab = slab.at[o_c:o_c + 1, :r].set(const)
    slab = slab.at[o_e:o_e + r, :rd].set(expand)
    slab = slab.at[o_t:o_t + d, :rd].set(repeat)
    slab = slab.at[o_w:o_w + rd, :c].set(w_fold)
    slab = slab.at[o_bb:o_bb + r, :c].set(b_fold)
    return slab


def nnon_singleton_fnn_forward(x, centers, sigmas, ns_sigma, weights, biases,
                               gamma, beta, *, ampli=0.0):
    n, d = x.shape
    r = centers.shape[1]
    c = weights.shape[2]
    rd = r * d
    slab = pack_params(centers, sigmas, ns_sigma, weights, biases, gamma, beta)

    kernel = functools.partial(_fnn_kernel, in_dim=d, n_rules=r, n_classes=c,
                               ampli=float(ampli))
    vmem = pl.BlockSpec(memory_space=pltpu.MemorySpace.VMEM)
    cost = pl.CostEstimate(
        flops=(2 * n * (2 * d) * r            # membership matmul
               + 2 * n * r * rd               # frs expansion
               + 2 * n * d * rd               # xhat replication
               + 2 * n * rd * c               # main consequent
               + 2 * n * r * c),              # bias matmul
        transcendentals=n * r + n,
        bytes_accessed=4 * (n * d + slab.size + n * c),
    )
    return pl.pallas_call(
        kernel,
        out_shape=jax.ShapeDtypeStruct((n, c), jnp.float32),
        in_specs=[vmem, vmem],                # 2 inputs: x + packed param slab
        out_specs=vmem,
        cost_estimate=cost,
    )(x, slab)


def reference_forward(x, centers, sigmas, ns_sigma, weights, biases, gamma,
                      beta, *, ampli=0.0):
    """Pure-JAX, fully elementwise (exact f32) mirror of the PyTorch forward."""
    den = 2.0 * sigmas ** 2 + ns_sigma ** 2
    raw_frs = jnp.exp(
        jnp.sum(-(x[:, :, None] - centers[None]) ** 2 / den[None], axis=1) + ampli)
    frs = raw_frs / (jnp.sum(raw_frs, axis=-1, keepdims=True) + 1e-10)
    mean = jnp.mean(x, axis=0, keepdims=True)
    var = jnp.mean((x - mean) ** 2, axis=0, keepdims=True)
    xn = (x - mean) / jnp.sqrt(var + 1e-5) * gamma + beta
    cons = jnp.sum(xn[:, None, :, None] * weights[None], axis=2) + biases[None]
    outs = cons * frs[:, :, None]
    return jnp.sum(outs, axis=1)


if __name__ == "__main__":
    # Small shapes consistent with the module: batch=8, in_dim=16, rules=8, classes=4
    N, D, R, C = 8, 16, 8, 4

    key = jax.random.PRNGKey(0)
    k_x, k_c, k_w, k_g, k_b = jax.random.split(key, 5)

    x = jax.random.normal(k_x, (N, D), dtype=jnp.float32)

    # Deterministic parameter init mirroring __init__ / build_model:
    init_centers = jax.random.normal(k_c, (D, R), dtype=jnp.float32)        # init_centers
    init_sigmas = jnp.ones((D, R), dtype=jnp.float32)                       # init_sigmas
    ns_sigma = jnp.ones((D, R), dtype=jnp.float32)                          # init_ns_sigma=1.0
    weights = jax.random.normal(k_w, (R, D, C), dtype=jnp.float32) / jnp.sqrt(
        jnp.float32(D))                                                      # normal_(std=1/sqrt(in_dim))
    biases = jnp.zeros((R, C), dtype=jnp.float32)                            # constant_(0)
    # BN affine (init is gamma=1, beta=0; perturb slightly to exercise folding).
    gamma = 1.0 + 0.1 * jax.random.normal(k_g, (1, D), dtype=jnp.float32)
    beta = 0.1 * jax.random.normal(k_b, (1, D), dtype=jnp.float32)

    out = nnon_singleton_fnn_forward(x, init_centers, init_sigmas, ns_sigma,
                                     weights, biases, gamma, beta, ampli=0.0)
    out = jax.block_until_ready(out)

    ref = reference_forward(x, init_centers, init_sigmas, ns_sigma, weights,
                            biases, gamma, beta, ampli=0.0)
    # Conservative tolerance (covers the expanded-quadratic membership and the
    # Newton-refined EUP reciprocal; actual error is far below this).
    np.testing.assert_allclose(np.asarray(out), np.asarray(ref),
                               rtol=5e-3, atol=5e-3)
    print("KERNEL_OK")
</pallas_src>

<mosaic_0001>
module attributes {stable_mosaic.version = 11 : i64} {
  func.func @_fnn_kernel(%arg0: memref<8x16xf32, #tpu.memory_space<vmem>>, %arg1: memref<200x128xf32, #tpu.memory_space<vmem>>, %arg2: memref<8x4xf32, #tpu.memory_space<vmem>>) attributes {dimension_semantics = [], scalar_prefetch = 0 : i64, scratch_operands = 0 : i64, tpu.core_type = #tpu.core_type<tc>} {
    %c0 = arith.constant 0 : index
    %c0_0 = arith.constant 0 : index
    %0 = vector.load %arg0[%c0, %c0_0] : memref<8x16xf32, #tpu.memory_space<vmem>>, vector<8x16xf32>
    %1 = arith.mulf %0, %0 : vector<8x16xf32>
    %2 = tpu.concatenate %0, %1 in 1 : vector<8x16xf32>, vector<8x16xf32> -> vector<8x32xf32>
    %c0_1 = arith.constant 0 : index
    %c0_2 = arith.constant 0 : index
    %3 = vector.load %arg1[%c0_1, %c0_2] : memref<200x128xf32, #tpu.memory_space<vmem>>, vector<32x8xf32>
    %cst = arith.constant dense<0.000000e+00> : vector<8x8xf32>
    %4 = tpu.matmul %2, %3, %cst {dimension_numbers = #tpu.dot_dimension_numbers<[1], [0], [0], [1], [0, 0, 1, 1], [], []>} : vector<8x32xf32>, vector<32x8xf32>, vector<8x8xf32> -> vector<8x8xf32>
    %c32 = arith.constant 32 : index
    %c0_3 = arith.constant 0 : index
    %5 = vector.load %arg1[%c32, %c0_3] : memref<200x128xf32, #tpu.memory_space<vmem>>, vector<1x8xf32>
    %6 = vector.broadcast %5 : vector<1x8xf32> to vector<8x8xf32>
    %7 = arith.subf %4, %6 : vector<8x8xf32>
    %8 = math.exp %7 : vector<8x8xf32>
    %cst_4 = arith.constant dense<0.000000e+00> : vector<8xf32>
    %9 = vector.multi_reduction <add>, %8, %cst_4 [1] : vector<8x8xf32> to vector<8xf32>
    %10 = vector.shape_cast %9 : vector<8xf32> to vector<8x1xf32>
    %cst_5 = arith.constant 1.000000e-10 : f32
    %11 = vector.broadcast %cst_5 : f32 to vector<8x1xf32>
    %12 = arith.addf %10, %11 : vector<8x1xf32>
    %13 = tpu.reciprocal %12 {approx = true} : vector<8x1xf32> -> vector<8x1xf32>
    %14 = arith.mulf %12, %13 : vector<8x1xf32>
    %cst_6 = arith.constant 2.000000e+00 : f32
    %15 = vector.broadcast %cst_6 : f32 to vector<8x1xf32>
    %16 = arith.subf %15, %14 : vector<8x1xf32>
    %17 = arith.mulf %13, %16 : vector<8x1xf32>
    %18 = vector.broadcast %17 : vector<8x1xf32> to vector<8x8xf32>
    %19 = arith.mulf %8, %18 : vector<8x8xf32>
    %cst_7 = arith.constant dense<0.000000e+00> : vector<16xf32>
    %20 = vector.multi_reduction <add>, %0, %cst_7 [0] : vector<8x16xf32> to vector<16xf32>
    %21 = vector.shape_cast %20 : vector<16xf32> to vector<1x16xf32>
    %cst_8 = arith.constant 8.000000e+00 : f32
    %22 = vector.broadcast %cst_8 : f32 to vector<1x16xf32>
    %23 = arith.divf %21, %22 : vector<1x16xf32>
    %24 = vector.broadcast %23 : vector<1x16xf32> to vector<8x16xf32>
    %25 = arith.subf %0, %24 : vector<8x16xf32>
    %26 = arith.mulf %25, %25 : vector<8x16xf32>
    %cst_9 = arith.constant dense<0.000000e+00> : vector<16xf32>
    %27 = vector.multi_reduction <add>, %26, %cst_9 [0] : vector<8x16xf32> to vector<16xf32>
    %28 = vector.shape_cast %27 : vector<16xf32> to vector<1x16xf32>
    %cst_10 = arith.constant 8.000000e+00 : f32
    %29 = vector.broadcast %cst_10 : f32 to vector<1x16xf32>
    %30 = arith.divf %28, %29 : vector<1x16xf32>
    %cst_11 = arith.constant 9.99999974E-6 : f32
    %31 = vector.broadcast %cst_11 : f32 to vector<1x16xf32>
    %32 = arith.addf %30, %31 : vector<1x16xf32>
    %33 = math.rsqrt %32 : vector<1x16xf32>
    %34 = vector.broadcast %33 : vector<1x16xf32> to vector<8x16xf32>
    %35 = arith.mulf %25, %34 : vector<8x16xf32>
    %c40 = arith.constant 40 : index
    %c0_12 = arith.constant 0 : index
    %36 = vector.load %arg1[%c40, %c0_12] : memref<200x128xf32, #tpu.memory_space<vmem>>, vector<8x128xf32>
    %cst_13 = arith.constant dense<0.000000e+00> : vector<8x128xf32>
    %37 = tpu.matmul %19, %36, %cst_13 {dimension_numbers = #tpu.dot_dimension_numbers<[1], [0], [0], [1], [0, 0, 1, 1], [], []>} : vector<8x8xf32>, vector<8x128xf32>, vector<8x128xf32> -> vector<8x128xf32>
    %c48 = arith.constant 48 : index
    %c0_14 = arith.constant 0 : index
    %38 = vector.load %arg1[%c48, %c0_14] : memref<200x128xf32, #tpu.memory_space<vmem>>, vector<16x128xf32>
    %cst_15 = arith.constant dense<0.000000e+00> : vector<8x128xf32>
    %39 = tpu.matmul %35, %38, %cst_15 {dimension_numbers = #tpu.dot_dimension_numbers<[1], [0], [0], [1], [0, 0, 1, 1], [], []>} : vector<8x16xf32>, vector<16x128xf32>, vector<8x128xf32> -> vector<8x128xf32>
    %40 = arith.mulf %37, %39 : vector<8x128xf32>
    %c64 = arith.constant 64 : index
    %c0_16 = arith.constant 0 : index
    %41 = vector.load %arg1[%c64, %c0_16] : memref<200x128xf32, #tpu.memory_space<vmem>>, vector<128x4xf32>
    %cst_17 = arith.constant dense<0.000000e+00> : vector<8x4xf32>
    %42 = tpu.matmul %40, %41, %cst_17 {dimension_numbers = #tpu.dot_dimension_numbers<[1], [0], [0], [1], [0, 0, 1, 1], [], []>} : vector<8x128xf32>, vector<128x4xf32>, vector<8x4xf32> -> vector<8x4xf32>
    %c192 = arith.constant 192 : index
    %c0_18 = arith.constant 0 : index
    %43 = vector.load %arg1[%c192, %c0_18] : memref<200x128xf32, #tpu.memory_space<vmem>>, vector<8x4xf32>
    %cst_19 = arith.constant dense<0.000000e+00> : vector<8x4xf32>
    %44 = tpu.matmul %19, %43, %cst_19 {dimension_numbers = #tpu.dot_dimension_numbers<[1], [0], [0], [1], [0, 0, 1, 1], [], []>} : vector<8x8xf32>, vector<8x4xf32>, vector<8x4xf32> -> vector<8x4xf32>
    %45 = arith.addf %42, %44 : vector<8x4xf32>
    %c0_20 = arith.constant 0 : index
    %c0_21 = arith.constant 0 : index
    %46 = vector.load %arg2[%c0_20, %c0_21] : memref<8x4xf32, #tpu.memory_space<vmem>>, vector<8x4xf32>
    tpu.vector_store %arg2[%c0_20, %c0_21], %45 {strides = array<i32>} : memref<8x4xf32, #tpu.memory_space<vmem>>, vector<8x4xf32>,
    return
  }
}

</mosaic_0001>

<bundles_post_ra>
// kernel: tpu_custom_call.1
= control target key start
LH: loop header
LB: loop body
LE: loop exit
PB: predicated region body
PF: predicated region fallthrough
CT: control target
= control target key end

     0   :  { %7 = vsyncpa [#allocation3], 0  ;;  %s769_s0 = inlined_call_operand.hbm [shape: f32[8,16], index: 0, kind: input, shape index: {}]   ;;  %s770_s1 = inlined_call_operand.hbm [shape: f32[200,128], index: 1, kind: input, shape index: {}]   ;;  %s771_s2 = inlined_call_operand.vmem [shape: f32[8,4], index: 2, kind: output, shape index: {}]  }
   0x1   :  { %8 = vsyncpa [#allocation5], 0  ;;  %s671_s9 = smov [#allocation2]   ;;  %s672_s11 = smov [#allocation4]  }
   0x2   :  { %s15_s10 = sshll.u32 %s671_s9, 4  ;;  %s24_s12 = sshll.u32 %s672_s11, 4  ;;  %s16_s10 = int_to_ptr.vmem [resolvable:$true] %s15_s10  ;;  %s694_s12 = int_to_ptr.vmem [resolvable:$true] %s24_s12 }
   0x3   :  { %s623_s15 = scalar_lea.hbm %s769_s0, 128 }
   0x4   :  { %p624_p0 = scmp.ne.s32.totalorder %s769_s0, %s623_s15  ;;  %p627_p1 = scmp.lt.u32.totalorder %s623_s15, %s769_s0 }
   0x6   :  { %p629_p2 = pnand %p627_p1, %p624_p0 }
   0x8   :  { %632 = shalt.err (!%p629_p2)
}
   0x9   :  { %s633_s20 = scalar_lea.vmem %s16_s10, 128  ;;  %p638_p4 = scmp.lt.s32.totalorder %s16_s10, %s16_s10 }
   0xa   :  { %p634_p3 = scmp.ne.s32.totalorder %s16_s10, %s633_s20  ;;  %p639_p5 = scmp.lt.s32.totalorder %s633_s20, %s633_s20 }
   0xc   :  { %p640_p6 = por %p639_p5, %p638_p4 }
   0xe   :  { %p641_p7 = pnand %p640_p6, %p634_p3 }
  0x10   :  { %644 = shalt.err (!%p641_p7)
}
  0x11   :  { %18 = dma.hbm_to_vmem [thread:$0]  %s769_s0, 128, %s16_s10, [#allocation3]  }
  0x12   :  { %s645_s25 = scalar_lea.hbm %s770_s1, 3200 }
  0x13   :  { %p646_p8 = scmp.ne.s32.totalorder %s770_s1, %s645_s25  ;;  %p649_p9 = scmp.lt.u32.totalorder %s645_s25, %s770_s1 }
  0x15   :  { %p651_p10 = pnand %p649_p9, %p646_p8 }
  0x17   :  { %654 = shalt.err (!%p651_p10)
}
  0x18   :  { %s655_s30 = scalar_lea.vmem %s694_s12, 3200  ;;  %p660_p12 = scmp.lt.s32.totalorder %s694_s12, %s694_s12 }
  0x19   :  { %p656_p11 = scmp.ne.s32.totalorder %s694_s12, %s655_s30  ;;  %p661_p13 = scmp.lt.s32.totalorder %s655_s30, %s655_s30 }
  0x1b   :  { %p662_p0 = por %p661_p13, %p660_p12 }
  0x1d   :  { %p663_p1 = pnand %p662_p0, %p656_p11 }
  0x1f   :  { %666 = shalt.err (!%p663_p1)
}
  0x20   :  { %s673_s0 = smov 128   ;;  %s674_s3 = smov 8  }
  0x21   :  { %30 = dma.hbm_to_vmem [thread:$0]  %s770_s1, 3200, %s694_s12, [#allocation5], %s673_s0, %s673_s0, %s674_s3  }
  0x22   :  { %667 = dma.done.wait [#allocation3], 128  }
  0x23   :  { %668 = vsyncadd [#allocation3], 4294967168 }
  0x24   :  { %669 = dma.done.wait [#allocation5], 3200  }
  0x25   :  { %670 = vsyncadd [#allocation5], 4294964096  ;;  %v675_v0 = vmov 0.0|0.0   ;;  %vm676_vm0 = vmmov 0   ;;  %v677_v1 = vmov 0.0   ;;  %v731_v2 = vld [vmem:[#allocation2] sm:$0xff] }
  0x26   :  { %575 = vmatprep.subr.bf16.mxu0 %v675_v0  ;;  %584 = vmatprep.subr.bf16.mxu1 %v675_v0  ;;  %v45_v3 = vld [vmem:[#allocation4] sm:$0xff]  ;;  %v46_v4 = vld [vmem:[#allocation4 + $0x8] sm:$0xff]  ;;  %v38_v5 = vmul.f32 %v731_v2, %v731_v2  ;;  %v47_v7 = vld [vmem:[#allocation4 + $0x10] sm:$0xff]  ;;  %s678_s1 = smov 16   ;;  %vm43_vm1 = vcmask 130048   ;;  %vm49_vm2 = vcmask 261120  }
  0x27   :  { %520 = vmatprep.mubr.msk.f32.mxu0 %vm676_vm0, %v677_v1  ;;  %572 = vmatprep.mubr.msk.f32.mxu1 %vm676_vm0, %v677_v1  ;;  %v576_v6 = vpack.c.bf16 %v46_v4, %v45_v3  ;;  %v48_v8 = vld [vmem:[#allocation4 + $0x18] sm:$0xff]  ;;  %v479_v12 = vld [vmem:[#allocation4 + $0x20] ss:$0 sm:$0xff]  ;;  %vm131_vm3 = vcmask 64512   ;;  %v163_v19 = vld [vmem:[#allocation4 + $0x28] sm:$0xff]  ;;  %v141_v38 = vsel %vm43_vm1, %v731_v2, 0.0 }
  0x28   :  { %40 = vrot.lane.b32.xlu0 %v38_v5, %s678_s1  ;;  %v579_v9 = vpack.c.bf16 %v48_v8, %v47_v7  ;;  %v313_v20 = vld [vmem:[#allocation4 + $0x40] sm:$0xff]  ;;  %v314_v21 = vld [vmem:[#allocation4 + $0x48] sm:$0xff]  ;;  %v315_v22 = vld [vmem:[#allocation4 + $0x50] sm:$0xff]  ;;  %v142_v39 = vrot.slane %v141_v38, 4  ;;  %vm470_vm4 = vcmask 31744  }
  0x29   :  { %577 = vmatpush3.bf16.msra.mxu0 %v576_v6  ;;  %v585_v23 = vpack.c.bf16 %v314_v21, %v313_v20  ;;  %v316_v24 = vld [vmem:[#allocation4 + $0x58] sm:$0xff]  ;;  %v317_v26 = vld [vmem:[#allocation4 + $0x60] sm:$0xff]  ;;  %v318_v27 = vld [vmem:[#allocation4 + $0x68] sm:$0xff] }
  0x2a   :  { %578 = vmatprep.subr.bf16.mxu0 %v675_v0  ;;  %v588_v25 = vpack.c.bf16 %v316_v24, %v315_v22  ;;  %v591_v28 = vpack.c.bf16 %v318_v27, %v317_v26  ;;  %v319_v29 = vld [vmem:[#allocation4 + $0x70] sm:$0xff]  ;;  %v320_v30 = vld [vmem:[#allocation4 + $0x78] sm:$0xff]  ;;  %v321_v32 = vld [vmem:[#allocation4 + $0x80] sm:$0xff]  ;;  %v143_v40 = vadd.f32 %v142_v39, %v141_v38 }
  0x2b   :  { %586 = vmatpush3.bf16.msra.mxu1 %v585_v23  ;;  %v594_v31 = vpack.c.bf16 %v320_v30, %v319_v29  ;;  %v322_v33 = vld [vmem:[#allocation4 + $0x88] sm:$0xff]  ;;  %v323_v35 = vld [vmem:[#allocation4 + $0x90] sm:$0xff]  ;;  %v324_v36 = vld [vmem:[#allocation4 + $0x98] sm:$0xff] }
  0x2c   :  { %587 = vmatprep.subr.bf16.mxu1 %v675_v0  ;;  %v597_v34 = vpack.c.bf16 %v322_v33, %v321_v32  ;;  %v600_v37 = vpack.c.bf16 %v324_v36, %v323_v35  ;;  %v144_v41 = vrot.slane %v143_v40, 2  ;;  %v237_v62 = vld [vmem:[#allocation4 + $0x30] sm:$0xff]  ;;  %v238_v63 = vld [vmem:[#allocation4 + $0x38] sm:$0xff]  ;;  %v329_v7 = vld [vmem:[#allocation4 + $0xc0] sm:$0xff] }
  0x2d   :  { %580 = vmatpush3.bf16.msra.mxu0 %v579_v9  ;;  %v582_v4 = vpack.c.bf16 %v238_v63, %v237_v62  ;;  %v325_v8 = vld [vmem:[#allocation4 + $0xa0] sm:$0xff]  ;;  %v326_v9 = vld [vmem:[#allocation4 + $0xa8] sm:$0xff] }
  0x2e   :  { %523 = vmatprep.subr.mxu0 %v677_v1  ;;  %v145_v42 = vadd.f32 %v144_v41, %v143_v40 }
  0x2f   :  { %589 = vmatpush3.bf16.msra.mxu1 %v588_v25 }
  0x30   :  { %590 = vmatprep.subr.bf16.mxu1 %v675_v0  ;;  %v146_v43 = vrot.slane %v145_v42, 1 }
  0x32   :  { %v147_v44 = vadd.f32 %v146_v43, %v145_v42 }
  0x33   :  { %592 = vmatpush3.bf16.msra.mxu1 %v591_v28 }
  0x34   :  { %593 = vmatprep.subr.bf16.mxu1 %v675_v0  ;;  %v149_v45 = vmul.f32 0.125, %v147_v44 }
  0x36   :  { %v150_v46 = vsub.f32 %v731_v2, %v149_v45 }
  0x37   :  { %595 = vmatpush3.bf16.msra.mxu1 %v594_v31 }
  0x38   :  { %596 = vmatprep.subr.bf16.mxu1 %v675_v0  ;;  %v151_v47 = vmul.f32 %v150_v46, %v150_v46 }
  0x3a   :  { %v152_v48 = vsel %vm43_vm1, %v151_v47, 0.0 }
  0x3b   :  { %598 = vmatpush3.bf16.msra.mxu1 %v597_v34  ;;  %v153_v49 = vrot.slane %v152_v48, 4 }
  0x3c   :  { %599 = vmatprep.subr.bf16.mxu1 %v675_v0 }
  0x3d   :  { %v154_v50 = vadd.f32 %v153_v49, %v152_v48 }
  0x3f   :  { %601 = vmatpush3.bf16.msra.mxu1 %v600_v37  ;;  %v155_v51 = vrot.slane %v154_v50, 2 }
  0x40   :  { %602 = vmatprep.subr.bf16.mxu1 %v675_v0 }
  0x41   :  { %v156_v52 = vadd.f32 %v155_v51, %v154_v50 }
  0x43   :  { %v157_v53 = vrot.slane %v156_v52, 1 }
  0x45   :  { %v158_v54 = vadd.f32 %v157_v53, %v156_v52 }
  0x47   :  { %v159_v57 = vmul.f32 0.125, %v158_v54 }
  0x49   :  { %v160_v58 = vadd.f32 1e-05, %v159_v57 }
  0x9a   :  { %v41_v10 = vpop.permute.xlu0 %40 }
  0x9b   :  { %v44_v11 = vsel %vm43_vm1, %v731_v2, %v41_v10  ;;  %v603_v10 = vpack.c.bf16 %v326_v9, %v325_v8 }
  0x9c   :  { %521 = vmatmul.mubr.msk.f32.vlgmr.msra.gmra.mrb[0].mxu0 %vm49_vm2, %v44_v11  ;;  %v327_v11 = vld [vmem:[#allocation4 + $0xb0] sm:$0xff] }
  0x9d   :  { %525 = vmatprep.mubr.msk.f32.mxu0 %vm676_vm0, %v677_v1  ;;  %524 = vmatpush3.msra.mxu0 %v163_v19 }
  0x9e   :  { %581 = vmatprep.subr.bf16.mxu0 %v675_v0  ;;  %604 = vmatpush3.bf16.msra.mxu1 %v603_v10 }
  0x9f   :  { %605 = vmatprep.subr.bf16.mxu1 %v675_v0 }
 0x16f   :  { %v119_v13 = vpop.f32.mrb[0].mxu0 }
 0x170   :  { %v128_v14 = vsub.f32 %v119_v13, %v479_v12  ;;  %v522_v15 = vpop.f32.mrb[1].mxu0  ;;  %v328_v12 = vld [vmem:[#allocation4 + $0xb8] sm:$0xff] }
 0x171   :  { %v606_v13 = vpack.c.bf16 %v328_v12, %v327_v11 }
 0x172   :  { %v129_v16 = vmul.f32 1.442695, %v128_v14 }
 0x173   :  { %607 = vmatpush3.bf16.msra.mxu1 %v606_v13 }
 0x174   :  { %617 = vpow2.f32 %v129_v16 }
 0x17e   :  { %v741_v17 = vpop.eup %617 }
 0x17f   :  { %v132_v18 = vsel %vm131_vm3, %v741_v17, 0.0 }
 0x180   :  { %133 = vadd.xlane.f32.xlu0 %v132_v18 }
 0x20d   :  { %v134_v55 = vpop.xlane.xlu0 %133 }
 0x20e   :  { %v135_v56 = vadd.f32 1e-10, %v134_v55 }
 0x210   :  { %619 = vrcp.f32 %v135_v56 }
 0x211   :  { %621 = vrsqrt.f32 %v160_v58 }
 0x21a   :  { %v620_v59 = vpop.eup %619 }
 0x21b   :  { %v137_v60 = vmul.f32 %v620_v59, %v135_v56  ;;  %v622_v3 = vpop.eup %621 }
 0x21c   :  { %v162_v6 = vmul.f32 %v622_v3, %v150_v46 }
 0x21d   :  { %v138_v61 = vsub.f32 2.0, %v137_v60 }
 0x21f   :  { %v139_v2 = vmul.f32 %v620_v59, %v138_v61 }
 0x221   :  { %v140_v5 = vmul.f32 %v741_v17, %v139_v2 }
 0x223   :  { %526 = vmatmul.mubr.msk.f32.vlgmr.msra.gmra.mrb[2].mxu0 %vm131_vm3, %v140_v5 }
 0x224   :  { %583 = vmatpush3.bf16.msra.mxu0 %v582_v4  ;;  %532 = vmatprep.mubr.msk.f32.mxu0 %vm676_vm0, %v677_v1 }
 0x225   :  { %535 = vmatprep.subr.mxu0 %v677_v1 }
 0x227   :  { %533 = vmatmul.mubr.msk.f32.vlgmr.msra.gmra.mrb[4].mxu0 %vm43_vm1, %v162_v6 }
 0x228   :  { %536 = vmatpush3.msra.mxu0 %v329_v7  ;;  %537 = vmatprep.mubr.msk.f32.mxu0 %vm676_vm0, %v677_v1 }
 0x22b   :  { %538 = vmatmul.mubr.msk.f32.vlgmr.msra.gmra.mrb[6].mxu0 %vm131_vm3, %v140_v5 }
 0x2f6   :  { %v233_v14 = vpop.f32.mrb[2].mxu0 }
 0x2f7   :  { %v527_v15 = vpop.f32.mrb[3].mxu0 }
 0x2fa   :  { %v308_v16 = vpop.f32.mrb[4].mxu0 }
 0x2fb   :  { %v312_v17 = vmul.f32 %v308_v16, %v233_v14  ;;  %v534_v18 = vpop.f32.mrb[5].mxu0 }
 0x2fd   :  { %573 = vmatmul.mubr.f32.vlgmr.msra.gmra.mrb[0].mxu1 %v312_v17 }
 0x2fe   :  { %v396_v19 = vpop.f32.mrb[6].mxu0 }
 0x2ff   :  { %v539_v1 = vpop.f32.mrb[7].mxu0 }
 0x3d0   :  { %v466_v20 = vpop.f32.mrb[0].mxu1 }
 0x3d1   :  { %v467_v21 = vadd.f32 %v466_v20, %v396_v19  ;;  %v574_v22 = vpop.f32.mrb[1].mxu1 }
 0x3d3   :  { %471 = vst.msk [vmem:[%s771_s2] sm:$0xff] %vm470_vm4, %v467_v21 }
 0x3d4   :  { %476 = vsyncpa [#allocation3], 1 }
 0x3d5   :  { %477 = vsyncpa [#allocation5], 1 }

</bundles_post_ra>
